<compile_context>
chip_gen: v6e
topology: v6e:2x2x1
jax: 0.10.0
libtpu: 0.0.40
codegen_flags: <defaults>
</compile_context>

<pallas_src>
import math

import jax
import jax.numpy as jnp
from jax.experimental import pallas as pl
from jax.experimental.pallas import tpu as pltpu

EPS = 1e-5  # nn.BatchNorm2d default eps


def _round_up(a, b):
    return (a + b - 1) // b * b


# ---------------------------------------------------------------------------
# Pass 1: per-batch partial Gram (x x^T) and column-sum accumulators.
# Grid: (N "parallel", hw-tiles "arbitrary"); accumulators are resident across hw-tiles.
# ---------------------------------------------------------------------------
def _stats_kernel(x_ref, g_ref, s_ref):
    @pl.when(pl.program_id(1) == 0)
    def _():
        g_ref[...] = jnp.zeros_like(g_ref)
        s_ref[...] = jnp.zeros_like(s_ref)

    x = x_ref[0]  # (Cin, tile_hw) f32, spatial on lanes
    # G += x @ x^T : contraction over the (large) lane axis, tiny (Cin, Cin) result.
    g_ref[0] = g_ref[0] + jax.lax.dot_general(
        x, x, dimension_numbers=(((1,), (1,)), ((), ())),
        preferred_element_type=jnp.float32)
    # colsum += sum over spatial (XLU cross-lane reduce; Cin rows only).
    s_ref[0] = s_ref[0] + jnp.sum(x, axis=1, keepdims=True)


# ---------------------------------------------------------------------------
# Pass 2: out = ReLU(Wfold^T @ x + c)   (BN scale/shift of both branches pre-folded)
# Lane-dense (1, Cout, tile_hw) stores straight into the NCHW output.
# ---------------------------------------------------------------------------
def _fused_bn_add_relu_kernel(x_ref, wt_ref, c_ref, o_ref):
    x = x_ref[0]        # (Cin, tile_hw) f32
    wt = wt_ref[...]    # (Cout, Cin)    f32
    cin = wt.shape[1]
    if cin <= 32:
        # Toy channel counts: K=Cin fills <2% of the MXU; do the projection as VPU
        # broadcast-FMAs on the lane-dense spatial layout (memory-bound -> effectively free).
        y = wt[:, 0:1] * x[0:1, :]
        for ci in range(1, cin):
            y = y + wt[:, ci:ci + 1] * x[ci:ci + 1, :]
    else:
        y = jax.lax.dot_general(
            wt, x, dimension_numbers=(((1,), (0,)), ((), ())),
            preferred_element_type=jnp.float32)
    o_ref[0] = jnp.maximum(y + c_ref[...], 0.0).astype(o_ref.dtype)


def mobile_backbone_stage2_forward(x_nchw, params, *, target_block_bytes=1 << 20):
    """Forward pass matching the PyTorch module (training-mode BatchNorm)."""
    N, Cin, H, W = x_nchw.shape
    Cout = params["pwl_w"].shape[1]
    HW = H * W
    M = N * HW  # global per-channel element count (BN divisor)

    # ---- tile selection: lane-dense blocks sized by bytes (~target_block_bytes of f32) ----
    max_cols = max(128, (target_block_bytes // (Cin * 4)) // 128 * 128)
    hw128 = _round_up(HW, 128)
    tile_hw = min(hw128, max_cols)
    HWp = _round_up(hw128, tile_hw)
    n_hw_tiles = HWp // tile_hw

    # NCHW-native layout: (N,Cin,H,W) -> (N,Cin,HW) is a free, contiguous reshape.
    # No transpose, no dtype-cast pass over the activations.
    x3 = x_nchw.reshape(N, Cin, HW)
    if HWp != HW:
        # Zero columns contribute exactly 0 to Gram and colsum (biases are dropped, see below),
        # and we divide by the *global* M, so padding is statistics-safe.
        x3 = jnp.pad(x3, ((0, 0), (0, 0), (0, HWp - HW)))

    block_bytes = tile_hw * (Cin + Cout) * 4
    vmem_limit = int(min(32 * 1024 * 1024, max(8 * 1024 * 1024, 8 * block_bytes)))

    # ---- pass 1: per-batch partial (Gram, colsum); batch axis parallel (megacore on v7x) ----
    stats_cost = pl.CostEstimate(
        flops=2 * N * HWp * Cin * Cin + N * HWp * Cin,
        transcendentals=0,
        bytes_accessed=N * HWp * Cin * 4 + N * Cin * (Cin + 1) * 4)
    g_parts, s_parts = pl.pallas_call(
        _stats_kernel,
        out_shape=(jax.ShapeDtypeStruct((N, Cin, Cin), jnp.float32),
                   jax.ShapeDtypeStruct((N, Cin, 1), jnp.float32)),
        grid=(N, n_hw_tiles),
        in_specs=[pl.BlockSpec((1, Cin, tile_hw), lambda n, t: (n, 0, t))],
        out_specs=(pl.BlockSpec((1, Cin, Cin), lambda n, t: (n, 0, 0)),
                   pl.BlockSpec((1, Cin, 1), lambda n, t: (n, 0, 0))),
        compiler_params=pltpu.CompilerParams(
            dimension_semantics=("parallel", "arbitrary"),
            vmem_limit_bytes=vmem_limit),
        cost_estimate=stats_cost,
    )(x3)

    # ---- finalize BN stats + fold everything into one (Cout,Cin) weight and (Cout,1) bias ----
    G = jnp.sum(g_parts, axis=0)                              # (Cin, Cin)
    s = jnp.sum(s_parts, axis=0)[:, 0]                        # (Cin,)

    # Depthwise 1x1 scale folded into the pointwise weight; all conv biases dropped:
    # a per-channel constant added before training-mode BN cancels in both mean and var.
    wl = params["pwl_w"] * params["dwl_w"].reshape(Cin, 1)    # (Cin, Cout)
    wr = params["pwr_w"] * params["dwr_w"].reshape(Cin, 1)    # (Cin, Cout)
    w_cat = jnp.concatenate([wl, wr], axis=1)                 # (Cin, 2*Cout)

    mean = (s @ w_cat) / M                                    # (2*Cout,)
    ey2 = jnp.sum(w_cat * (G @ w_cat), axis=0) / M            # diag(Wcat^T G Wcat) / M
    var = jnp.maximum(ey2 - mean * mean, 0.0)                 # cancellation guard
    inv = jax.lax.rsqrt(var + EPS)

    gamma = jnp.concatenate([params["gl"].reshape(-1), params["gr"].reshape(-1)])
    beta = jnp.concatenate([params["bl"].reshape(-1), params["br"].reshape(-1)])
    a = inv * gamma                                           # per-channel scale
    c = beta - mean * a                                       # per-channel shift
    # BN_l(x@Wl) + BN_r(x@Wr) = x @ (Wl*a_l + Wr*a_r) + (c_l + c_r)
    w_fold = wl * a[:Cout] + wr * a[Cout:]                    # (Cin, Cout)
    wt_fold = jnp.transpose(w_fold)                           # (Cout, Cin) -- parameter-sized
    c_fold = (c[:Cout] + c[Cout:]).reshape(Cout, 1)           # (Cout, 1)

    # ---- pass 2: recompute the cheap projection per tile, normalize+add+ReLU+store ----
    # Output stays f32 to match the module's output dtype.
    # TODO(synk): optionally emit bf16 here if downstream consumers accept it (halves writes).
    norm_cost = pl.CostEstimate(
        flops=2 * N * HWp * Cin * Cout + 2 * N * HWp * Cout,
        transcendentals=0,
        bytes_accessed=N * HWp * (Cin + Cout) * 4 + Cout * (Cin + 1) * 4)
    out3 = pl.pallas_call(
        _fused_bn_add_relu_kernel,
        out_shape=jax.ShapeDtypeStruct((N, Cout, HWp), jnp.float32),
        grid=(N, n_hw_tiles),
        in_specs=[pl.BlockSpec((1, Cin, tile_hw), lambda n, t: (n, 0, t)),
                  pl.BlockSpec((Cout, Cin), lambda n, t: (0, 0)),
                  pl.BlockSpec((Cout, 1), lambda n, t: (0, 0))],
        out_specs=pl.BlockSpec((1, Cout, tile_hw), lambda n, t: (n, 0, t)),
        compiler_params=pltpu.CompilerParams(
            dimension_semantics=("parallel", "parallel"),
            vmem_limit_bytes=vmem_limit),
        cost_estimate=norm_cost,
    )(x3, wt_fold, c_fold)

    if HWp != HW:
        out3 = out3[:, :, :HW]
    return out3.reshape(N, Cout, H, W)


# ---------------------------------------------------------------------------
# Parameter init + pure-JAX f32 reference (mirrors the PyTorch forward exactly,
# including the biases that the kernel algebraically drops).
# ---------------------------------------------------------------------------
def init_params(key, cin, cout):
    ks = jax.random.split(key, 12)
    dw_bound = 1.0 / math.sqrt(cin)
    pw_bound = 1.0 / math.sqrt(cin)

    def u(k, shape, bound):
        return jax.random.uniform(k, shape, jnp.float32, -bound, bound)

    return {
        "dwl_w": u(ks[0], (1, cin), dw_bound), "dwl_b": u(ks[1], (1, cin), dw_bound),
        "pwl_w": u(ks[2], (cin, cout), pw_bound), "pwl_b": u(ks[3], (1, cout), pw_bound),
        "gl": 1.0 + 0.1 * u(ks[4], (1, cout), 1.0), "bl": 0.1 * u(ks[5], (1, cout), 1.0),
        "dwr_w": u(ks[6], (1, cin), dw_bound), "dwr_b": u(ks[7], (1, cin), dw_bound),
        "pwr_w": u(ks[8], (cin, cout), pw_bound), "pwr_b": u(ks[9], (1, cout), pw_bound),
        "gr": 1.0 + 0.1 * u(ks[10], (1, cout), 1.0), "br": 0.1 * u(ks[11], (1, cout), 1.0),
    }


def reference_forward(x_nchw, p):
    N, Cin, H, W = x_nchw.shape
    x = jnp.transpose(x_nchw, (0, 2, 3, 1)).reshape(-1, Cin).astype(jnp.float32)

    def branch(dw_w, dw_b, pw_w, pw_b, g, b):
        y = x * dw_w + dw_b                       # depthwise 1x1 (+ bias)
        y = y @ pw_w + pw_b                       # pointwise 1x1 (+ bias)
        mean = y.mean(axis=0, keepdims=True)      # training-mode BN, biased var
        var = ((y - mean) ** 2).mean(axis=0, keepdims=True)
        return (y - mean) / jnp.sqrt(var + EPS) * g + b

    out = jax.nn.relu(
        branch(p["dwl_w"], p["dwl_b"], p["pwl_w"], p["pwl_b"], p["gl"], p["bl"])
        + branch(p["dwr_w"], p["dwr_b"], p["pwr_w"], p["pwr_b"], p["gr"], p["br"]))
    Cout = p["pwl_w"].shape[1]
    return out.reshape(N, H, W, Cout).transpose(0, 3, 1, 2)


if __name__ == "__main__":
    key = jax.random.PRNGKey(0)
    k_x, k_p = jax.random.split(key)

    N, Cin, H, W = 2, 4, 16, 16
    Cout = 8

    x = jax.random.normal(k_x, (N, Cin, H, W), jnp.float32)
    params = init_params(k_p, Cin, Cout)

    out = mobile_backbone_stage2_forward(x, params)
    out = jax.block_until_ready(out)

    ref = reference_forward(x, params)
    assert out.shape == (N, Cout, H, W), out.shape
    # All arithmetic is f32 (no bf16 operands anymore), so agreement with the pure-f32
    # reference is tight; the only algorithmic difference is E[y^2]-mean^2 vs centered var.
    max_err = float(jnp.max(jnp.abs(out - ref)))
    assert jnp.allclose(out, ref, atol=1e-3, rtol=1e-3), max_err

    print("KERNEL_OK")
</pallas_src>

<mosaic_0001>
module attributes {stable_mosaic.version = 11 : i64} {
  func.func @_stats_kernel(%arg0: i32, %arg1: i32, %arg2: memref<1x4x256xf32, #tpu.memory_space<vmem>>, %arg3: memref<1x4x4xf32, #tpu.memory_space<vmem>>, %arg4: memref<1x4x1xf32, #tpu.memory_space<vmem>>) attributes {dimension_semantics = [#tpu.dimension_semantics<parallel>, #tpu.dimension_semantics<arbitrary>], iteration_bounds = array<i64: 2, 1>, scalar_prefetch = 0 : i64, scratch_operands = 0 : i64, tpu.core_type = #tpu.core_type<tc>, window_params = [{transform_indices = @transform_0, window_bounds = array<i64: 1, 4, 256>}, {transform_indices = @transform_1, window_bounds = array<i64: 1, 4, 4>}, {transform_indices = @transform_2, window_bounds = array<i64: 1, 4, 1>}]} {
    %c0_i32 = arith.constant 0 : i32
    %0 = arith.cmpi eq, %arg1, %c0_i32 : i32
    %1 = arith.extui %0 : i1 to i32
    %c0_i32_0 = arith.constant 0 : i32
    %2 = arith.cmpi ne, %1, %c0_i32_0 : i32
    scf.if %2 {
      %cst_16 = arith.constant 0.000000e+00 : f32
      %20 = vector.broadcast %cst_16 : f32 to vector<1x4x4xf32>
      %c0_17 = arith.constant 0 : index
      %c0_18 = arith.constant 0 : index
      %c0_19 = arith.constant 0 : index
      %21 = vector.load %arg3[%c0_17, %c0_18, %c0_19] : memref<1x4x4xf32, #tpu.memory_space<vmem>>, vector<1x4x4xf32>
      tpu.vector_store %arg3[%c0_17, %c0_18, %c0_19], %20 {strides = array<i32>} : memref<1x4x4xf32, #tpu.memory_space<vmem>>, vector<1x4x4xf32>,
      %cst_20 = arith.constant 0.000000e+00 : f32
      %22 = vector.broadcast %cst_20 : f32 to vector<1x4x1xf32>
      %c0_21 = arith.constant 0 : index
      %c0_22 = arith.constant 0 : index
      %c0_23 = arith.constant 0 : index
      %23 = vector.load %arg4[%c0_21, %c0_22, %c0_23] : memref<1x4x1xf32, #tpu.memory_space<vmem>>, vector<1x4x1xf32>
      tpu.vector_store %arg4[%c0_21, %c0_22, %c0_23], %22 {strides = array<i32>} : memref<1x4x1xf32, #tpu.memory_space<vmem>>, vector<1x4x1xf32>,
    } else {
    }
    %c0 = arith.constant 0 : index
    %c0_1 = arith.constant 0 : index
    %c0_2 = arith.constant 0 : index
    %3 = vector.load %arg2[%c0, %c0_1, %c0_2] : memref<1x4x256xf32, #tpu.memory_space<vmem>>, vector<1x4x256xf32>
    %4 = vector.shape_cast %3 : vector<1x4x256xf32> to vector<4x256xf32>
    %c0_3 = arith.constant 0 : index
    %c0_4 = arith.constant 0 : index
    %c0_5 = arith.constant 0 : index
    %5 = vector.load %arg3[%c0_3, %c0_4, %c0_5] : memref<1x4x4xf32, #tpu.memory_space<vmem>>, vector<1x4x4xf32>
    %6 = vector.shape_cast %5 : vector<1x4x4xf32> to vector<4x4xf32>
    %cst = arith.constant dense<0.000000e+00> : vector<4x4xf32>
    %7 = tpu.matmul %4, %4, %cst {dimension_numbers = #tpu.dot_dimension_numbers<[1], [1], [0], [0], [0, 0, 1, 0], [], []>} : vector<4x256xf32>, vector<4x256xf32>, vector<4x4xf32> -> vector<4x4xf32>
    %8 = arith.addf %6, %7 : vector<4x4xf32>
    %c0_6 = arith.constant 0 : index
    %c0_7 = arith.constant 0 : index
    %c0_8 = arith.constant 0 : index
    %9 = vector.load %arg3[%c0_6, %c0_7, %c0_8] : memref<1x4x4xf32, #tpu.memory_space<vmem>>, vector<1x4x4xf32>
    %10 = vector.shape_cast %9 : vector<1x4x4xf32> to vector<4x4xf32>
    %11 = vector.shape_cast %8 : vector<4x4xf32> to vector<1x4x4xf32>
    tpu.vector_store %arg3[%c0_6, %c0_7, %c0_8], %11 {strides = array<i32>} : memref<1x4x4xf32, #tpu.memory_space<vmem>>, vector<1x4x4xf32>,
    %c0_9 = arith.constant 0 : index
    %c0_10 = arith.constant 0 : index
    %c0_11 = arith.constant 0 : index
    %12 = vector.load %arg4[%c0_9, %c0_10, %c0_11] : memref<1x4x1xf32, #tpu.memory_space<vmem>>, vector<1x4x1xf32>
    %13 = vector.shape_cast %12 : vector<1x4x1xf32> to vector<4x1xf32>
    %cst_12 = arith.constant dense<0.000000e+00> : vector<4xf32>
    %14 = vector.multi_reduction <add>, %4, %cst_12 [1] : vector<4x256xf32> to vector<4xf32>
    %15 = vector.shape_cast %14 : vector<4xf32> to vector<4x1xf32>
    %16 = arith.addf %13, %15 : vector<4x1xf32>
    %c0_13 = arith.constant 0 : index
    %c0_14 = arith.constant 0 : index
    %c0_15 = arith.constant 0 : index
    %17 = vector.load %arg4[%c0_13, %c0_14, %c0_15] : memref<1x4x1xf32, #tpu.memory_space<vmem>>, vector<1x4x1xf32>
    %18 = vector.shape_cast %17 : vector<1x4x1xf32> to vector<4x1xf32>
    %19 = vector.shape_cast %16 : vector<4x1xf32> to vector<1x4x1xf32>
    tpu.vector_store %arg4[%c0_13, %c0_14, %c0_15], %19 {strides = array<i32>} : memref<1x4x1xf32, #tpu.memory_space<vmem>>, vector<1x4x1xf32>,
    return
  }
  func.func @transform_0(%arg0: i32, %arg1: i32) -> (i32, i32, i32) {
    %c0_i32 = arith.constant 0 : i32
    %c0_i32_0 = arith.constant 0 : i32
    return %arg0, %c0_i32, %arg1 : i32, i32, i32
  }
  func.func @transform_1(%arg0: i32, %arg1: i32) -> (i32, i32, i32) {
    %c0_i32 = arith.constant 0 : i32
    %c0_i32_0 = arith.constant 0 : i32
    %c0_i32_1 = arith.constant 0 : i32
    return %arg0, %c0_i32, %c0_i32_0 : i32, i32, i32
  }
  func.func @transform_2(%arg0: i32, %arg1: i32) -> (i32, i32, i32) {
    %c0_i32 = arith.constant 0 : i32
    %c0_i32_0 = arith.constant 0 : i32
    %c0_i32_1 = arith.constant 0 : i32
    return %arg0, %c0_i32, %c0_i32_0 : i32, i32, i32
  }
}

</mosaic_0001>

<bundles_post_ra>
// kernel: tpu_custom_call.1
= control target key start
LH: loop header
LB: loop body
LE: loop exit
PB: predicated region body
PF: predicated region fallthrough
CT: control target
= control target key end

     0   :  { %8 = vsyncpa [#allocation3], 0  ;;  %s772_s0 = inlined_call_operand.hbm [shape: f32[2,4,256], index: 0, kind: input, shape index: {}]   ;;  %s773_s1 = inlined_call_operand.hbm [shape: f32[2,4,4], index: 1, kind: output, shape index: {0}]   ;;  %s774_s2 = inlined_call_operand.vmem [shape: f32[2,4,1], index: 2, kind: output, shape index: {1}]  }
   0x1   :  { %10 = vsyncpa [#allocation3 + $0x1], 0 }
   0x2   :  { %11 = vsyncpa [#allocation4], 0 }
   0x3   :  { %13 = vsyncpa [#allocation4 + $0x1], 0  ;;  %s618_s9 = smov 0   ;;  %s620_s10 = smov 0  }
   0x4   :  { %s622_s11 = smov 0   ;;  %s624_s12 = smov 0  }
   0x5   :  { %s626_s13 = smov 0   ;;  %s628_s14 = smov 0  }
   0x6 LB: > { %s410_s15 = sadd.s32 4294967295, %s598_s14   ;;  %s411_s16 = sadd.s32 4294967294, %s598_s14   ;;  %s598_s14 = sphi %s628_s14, %s19_s14   ;;  %s594_s13 = sphi %s626_s13, %s786_s13   ;;  %s590_s12 = sphi %s624_s12, %s785_s12   ;;  %s586_s11 = sphi %s622_s11, %s784_s11   ;;  %s582_s10 = sphi %s620_s10, %s783_s10   ;;  %s578_s9 = sphi %s618_s9, %s782_s9  }
   0x7   : > { %s31_s17 = sadd.s32 1, %s594_s13  ;;  %s40_s18 = sadd.s32 1, %s586_s11 }
   0x8   : > { %p33_p0 = scmp.ge.s32.totalorder %s31_s17, 2  ;;  %p47_p1 = scmp.ne.s32.totalorder %s586_s11, %s582_s10 }
   0x9   : > { %p48_p2 = scmp.eq.s32.totalorder %s598_s14, 0  ;;  %p53_p3 = scmp.ne.s32.totalorder %s582_s10, %s578_s9 }
   0xa   : > { %s788_s17 = smov (%p33_p0, %s31_s17), 0  ;;  %p54_p5 = scmp.eq.s32.totalorder %s410_s15, 0 }
   0xb   : > { %p659_p4 = por %p48_p2, %p47_p1  ;;  %s35_s20 = ssub.s32 %s594_s13, %s788_s17 }
   0xc   : > { %p77_p6 = scmp.eq.s32.totalorder %s410_s15, 1  ;;  %p38_p7 = scmp.eq.s32.totalorder %s35_s20, 0 }
   0xd   : > { %p665_p8 = por %p54_p5, %p53_p3  ;;  %p83_p10 = scmp.eq.s32.totalorder %s411_s16, 1 }
   0xe   : > { %p669_p9 = por %p77_p6, %p47_p1  ;;  %p438_p13 = scmp.lt.s32.totalorder %s598_s14, 2 }
   0xf   : > { %s674_s23 = scalar_select %p38_p7, %s586_s11, %s40_s18  }
  0x10   : > { %p676_p11 = por %p83_p10, %p53_p3  ;;  %s129_s25 = sand.u32 1, %s586_s11  }
  0x11   : > { %s414_s26 = sshll.u32 %s129_s25, 3  ;;  %s425_s27 = sshll.u32 %s594_s13, 7 }
  0x12   : > { %s778_s24 = scalar_select %p676_p11, 1, 0 }
  0x13   : > { %s141_s30 = scalar_lea.hbm %s772_s0, %s425_s27  ;;  %s133_s3 = scalar_lea.vmem [#allocation2], %s414_s26 }
  0x14   : > { %s143_s4 = sshll.u32 %s133_s3, 4  ;;  %p689_p0 = pnand %p438_p13, %p659_p4  ;;  %s144_s4 = int_to_ptr.vmem [resolvable:$true] %s143_s4 }
  0x15   : > { %p417_p1 = scmp.ge.s32.totalorder %s598_s14, 1  ;;  %p148_p2 = scmp.lt.s32.totalorder %s598_s14, 3 }
  0x16   : > { %s130_s6 = scalar_lea.sflag [#allocation3], %s129_s25  ;;  %p492_p3 = pneg %p689_p0 }
  0x17   : > { %s503_s7 = scalar_lea.vmem %s144_s4, 128  ;;  %s600_s8 = smov [#allocation2]  }
  0x18   : > { %p504_p5 = scmp.ne.s32.totalorder %s144_s4, %s503_s7  ;;  %s508_s15 = sshll.u32 %s600_s8, 4  ;;  %s509_s15 = int_to_ptr.vmem [resolvable:$false] %s508_s15 }
  0x19   : > { %s510_s16 = scalar_lea.vmem %s509_s15, 256  ;;  %p511_p10 = scmp.lt.s32.totalorder %s144_s4, %s509_s15 }
  0x1a   : > { %p506_p6 = pnand %p504_p5, %p492_p3  ;;  %p512_p12 = scmp.lt.s32.totalorder %s510_s16, %s503_s7 }
  0x1c   : > { %p507_p7 = pneg %p506_p6  ;;  %p513_p4 = por %p512_p12, %p511_p10 }
  0x1e   : > { %p514_p13 = pnand %p513_p4, %p507_p7 }
  0x20   : > { %517 = shalt.err (!%p514_p13)
}
  0x21   : > { %433 = dma.hbm_to_vmem [thread:$0]  (!%p689_p0), %s141_s30, 128, %s144_s4, %s130_s6  }
  0x22   : > { %p149_p11 = pnand %p417_p1, %p148_p2 }
  0x23   : > { %s704_s18 = sand.u32 (!%p149_p11), 1, %s582_s10  }
  0x24   : > { %152 = sbr.rel (%p149_p11) target bundleno = 257 (0x101), region = 24  ;;  %s418_s19 = sshll.u32 (!%p149_p11), %s704_s18, 3 }
  0x25   : > { %s155_s20 = scalar_lea.sflag (!%p149_p11), [#allocation3], %s704_s18  ;;  %s158_s25 = scalar_lea.vmem (!%p149_p11), [#allocation2], %s418_s19 }
  0x29   : > { %569 = dma.done.wait (%p665_p8), %s155_s20, 128  }
  0x2a   : > { %571 = vsyncadd (%p665_p8), %s155_s20, 4294967168  ;;  %s419_s26 = sshll.u32 %s704_s18, 2  ;;  %vm192_vm0 = vcmask 27648   ;;  %v601_v0 = vmov 0.0   ;;  %vm275_vm1 = vcmask 1043456   ;;  %v196_v1 = vld [vmem:[%s158_s25] sm:$0xff] }
  0x2b   : > { %s713_s27 = scalar_lea.vmem [#allocation5], %s419_s26  ;;  %v199_v2 = vcombine.high %v196_v1, %v196_v1  ;;  %v276_v3 = vsel %vm275_vm1, %v196_v1, 0.0  ;;  %p184_p8 = scmp.lt.s32.totalorder %s590_s12, 1  ;;  %vm194_vm2 = vcmask 3072  }
  0x2c   : > { %193 = vst.msk [vmem:[%s713_s27] sm:$0xf] %vm192_vm0, %v601_v0  ;;  %s422_s4 = sshll.u32 %s590_s12, 6  ;;  %s302_s5 = sshll.u32 %s713_s27, 4  ;;  %s303_s5 = int_to_ptr.vmem [resolvable:$true] %s302_s5 }
  0x2d   : > { %231 = vmatprep.subr.mxu0 %v199_v2  ;;  %265 = vmatprep.mubr.f32.mxu0 %v199_v2  ;;  %v277_v4 = vsel %vm275_vm1, %v199_v2, 0.0  ;;  %s185_s21 = scalar_select %p184_p8, %s590_s12, 1 }
  0x2e   : > { %232 = vmatpush1.xpose.msra.mxu0 %v196_v1  ;;  %v278_v5 = vadd.f32 %v277_v4, %v276_v3  ;;  %s728_s8 = scalar_lea.hbm %s773_s1, %s422_s4  ;;  %s285_s15 = scalar_lea.sflag [#allocation4], %s704_s18 }
  0x2f   : > { %s420_s28 = sshll.u32 %s185_s21, 2  ;;  %s518_s16 = scalar_lea.vmem %s303_s5, 64 }
  0x30   : > { %279 = vadd.xlane.f32.xlu0 %v278_v5  ;;  %s187_s3 = scalar_lea.vmem %s774_s2, %s420_s28  ;;  %p519_p11 = scmp.ne.s32.totalorder %s303_s5, %s518_s16 }
  0x31   : > { %266 = vmatmul.mubr.f32.vlgmr.msra.gmra.mxu0 %v196_v1  ;;  %195 = vst.msk [vmem:[%s187_s3] sm:$0xf] %vm194_vm2, %v601_v0  ;;  %s602_s19 = smov [#allocation5]  }
  0x32   : > { %p520_p12 = pnand %p519_p11, %p669_p9  ;;  %s522_s12 = sshll.u32 %s602_s19, 4  ;;  %s523_s12 = int_to_ptr.vmem [resolvable:$false] %s522_s12 }
  0x33   : > { %v197_v9 = vld [vmem:[%s713_s27] sm:$0xf]  ;;  %s524_s20 = scalar_lea.vmem %s523_s12, 128  ;;  %p525_p1 = scmp.lt.s32.totalorder %s303_s5, %s523_s12 }
  0x34   : > { %p521_p0 = pneg %p520_p12  ;;  %p526_p2 = scmp.lt.s32.totalorder %s524_s20, %s518_s16 }
  0x36   : > { %p527_p3 = por %p526_p2, %p525_p1 }
  0x38   : > { %v274_v6 = vld [vmem:[%s187_s3] sm:$0xf]  ;;  %p528_p5 = pnand %p527_p3, %p521_p0 }
  0xb9   : > { %v280_v7 = vpop.xlane.xlu0 %279 }
  0xba   : > { %v281_v8 = vadd.f32 %v280_v7, %v274_v6 }
  0xbc   : > { %283 = vst.msk [vmem:[%s187_s3] sm:$0xf] %vm194_vm2, %v281_v8 }
  0xf1   : > { %v267_v10 = vpop.f32.mrf.mxu0 }
  0xf2   : > { %v271_v11 = vadd.f32 %v267_v10, %v197_v9 }
  0xf3   : > { %v269_v12 = vpop.f32.mrf.mxu0 }
  0xf4   : > { %273 = vst.msk [vmem:[%s713_s27] sm:$0xf] %vm192_vm0, %v271_v11 }
  0xf5   : > { %531 = shalt.err (!%p528_p5)
}
  0xf6   : > { %s532_s25 = scalar_lea.hbm %s728_s8, 64  ;;  %s536_s27 = scalar_lea.hbm %s773_s1, 128 }
  0xf7   : > { %p533_p6 = scmp.ne.s32.totalorder %s728_s8, %s532_s25  ;;  %p537_p4 = scmp.lt.s32.totalorder %s728_s8, %s773_s1 }
  0xf8   : > { %p538_p13 = scmp.lt.s32.totalorder %s536_s27, %s532_s25 }
  0xf9   : > { %p534_p7 = pnand %p533_p6, %p669_p9 }
  0xfa   : > { %p539_p8 = por %p538_p13, %p537_p4 }
  0xfb   : > { %p535_p10 = pneg %p534_p7 }
  0xfd   : > { %p540_p11 = pnand %p539_p8, %p535_p10 }
  0xff   : > { %543 = shalt.err (!%p540_p11)
}
 0x100   : > { %428 = dma.vmem_to_hbm [thread:$0]  (%p669_p9), %s303_s5, 64, %s728_s8, %s285_s15  }
 0x101 PF: > { %s317_s29 = sand.u32 1, %s578_s9   ;;  %p780_p12 = scmp.ne.s32.totalorder %s778_s24, 0 }
 0x102   : > { %p781_p0 = scmp.ge.s32.totalorder %s598_s14, 2  ;;  %s318_s30 = scalar_lea.sflag [#allocation4], %s317_s29 }
 0x104   : > { %p435_p1 = pnand %p781_p0, %p780_p12 }
 0x106   : > { %p436_p2 = pneg %p435_p1 }
 0x108   : > { %573 = dma.done.wait (%p436_p2), %s318_s30, 64  }
 0x109   : > { %575 = vsyncadd (%p436_p2), %s318_s30, 4294967232  ;;  %s19_s14 = sadd.s32 1, %s598_s14   ;;  %s782_s9 = smov %s582_s10 }
 0x10a   : > { %p16_p3 = scmp.ge.s32.totalorder %s19_s14, 4   ;;  %s783_s10 = smov %s586_s11 }
 0x10b   : > { %s784_s11 = smov %s674_s23  ;;  %s785_s12 = smov %s594_s13 }
 0x10c   : > { %s786_s13 = smov %s788_s17  ;;  %18 = sbr.rel (!%p16_p3) target bundleno = 6 (0x6), region = 85 }
 0x111   :  { %330 = vsyncpa [#allocation3], 1 }
 0x112   :  { %332 = vsyncpa [#allocation3 + $0x1], 1 }
 0x113   :  { %333 = vsyncpa [#allocation4], 1 }
 0x114   :  { %335 = vsyncpa [#allocation4 + $0x1], 1 }

</bundles_post_ra>
